<compile_context>
chip_gen: v7x
topology: tpu7x:2x2x1
jax: 0.10.0
libtpu: 0.0.40
codegen_flags: <defaults>
</compile_context>

<pallas_src>
import functools

import jax
import jax.numpy as jnp
from jax.experimental import pallas as pl
from jax.experimental.pallas import tpu as pltpu


VMEM_LIMIT = 48 * 1024 * 1024   # leave headroom on v7x's 64 MiB physical VMEM


def _cparams(dims):
    return pltpu.CompilerParams(dimension_semantics=dims,
                                vmem_limit_bytes=VMEM_LIMIT)


def _pick_tile(n, cap=512):
    """Largest 128-multiple tile <= cap that divides n, else the full dim.
    (cap=1024 is fine on v5e/v6e's 128 MiB VMEM; keep <=512 on v7x.)"""
    for t in (1024, 512, 256, 128):
        if t <= cap and t <= n and n % t == 0:
            return t
    return n


# ----------------------------------------------------------------------------
# Kernel A: per-metapath projection, destination-major.
#   wht[p] = W[p]^T @ h^T            (HF, N)  bf16   (lane-dense, N on lanes)
#   el[p]  = h @ (W[p] @ a_l[p]^T)   (N, H)   f32    source attention terms
#   er[p]  = (a_r[p] @ W[p]^T) @ h^T (H, N)   f32    destination attention terms
# ----------------------------------------------------------------------------
def _gat_proj_kernel(h_ref, ht_ref, wt_ref, wal_ref, war_ref,
                     wht_ref, el_ref, er_ref):
    wht_ref[...] = jnp.dot(wt_ref[...], ht_ref[...],
                           preferred_element_type=jnp.float32
                           ).astype(jnp.bfloat16)
    er_ref[...] = jnp.dot(war_ref[...], ht_ref[...],
                          preferred_element_type=jnp.float32)
    el_ref[...] = jnp.dot(h_ref[...], wal_ref[...],
                          preferred_element_type=jnp.float32)


# ----------------------------------------------------------------------------
# Kernel B: flash-style masked attention softmax + aggregation + bias + ELU,
# with the SemanticAttention per-metapath score fused into the finalize.
#   grid = (metapath p, destination tile i, source tile j)   (j innermost)
#   Everything is destination-major: e/p are (TJ_src, TI_dst), m/l are (H, TI),
#   acc and the output are (HF, TI)  ->  lane-dense reduces, stores and dots.
# ----------------------------------------------------------------------------
def _gat_attn_kernel(wht_ref, el_ref, er_ref, adj_ref, b_ref,
                     w1t_ref, b1_ref, w2_ref,
                     z_ref, score_ref, m_ref, l_ref, acc_ref, *, H, Fout):
    i = pl.program_id(1)
    j = pl.program_id(2)
    nj = pl.num_programs(2)

    @pl.when((i == 0) & (j == 0))
    def _init_score():
        score_ref[...] = jnp.zeros_like(score_ref)

    @pl.when(j == 0)
    def _init():
        m_ref[...] = jnp.full_like(m_ref, -1e30)
        l_ref[...] = jnp.zeros_like(l_ref)
        acc_ref[...] = jnp.zeros_like(acc_ref)

    # int8 adjacency tile (sources on sublanes, destinations on lanes);
    # adj_t[s, d] != 0  <=>  edge s -> d.  Compared directly in int8.
    mask = adj_ref[...] > 0                                    # (TJ, TI) bool

    for hh in range(H):                                        # H small & static
        sl = slice(hh * Fout, (hh + 1) * Fout)
        # e[s, d] = LeakyReLU(el_s + er_d); el/er were precomputed in kernel A.
        e = el_ref[:, hh:hh + 1] + er_ref[hh:hh + 1, :]        # (TJ, TI)
        e = jnp.where(e > 0, e, 0.2 * e)                       # LeakyReLU(0.2)
        e = jnp.where(mask, e, -1e30)

        # Online (flash-style) masked softmax over source tiles.
        m_old = m_ref[hh:hh + 1, :]
        m_new = jnp.maximum(m_old, jnp.max(e, axis=0, keepdims=True))
        scale = jnp.exp(m_old - m_new)
        p = jnp.where(mask, jnp.exp(e - m_new), 0.0)           # (TJ, TI)
        l_ref[hh:hh + 1, :] = (scale * l_ref[hh:hh + 1, :]
                               + jnp.sum(p, axis=0, keepdims=True))
        m_ref[hh:hh + 1, :] = m_new
        acc_ref[sl, :] = scale * acc_ref[sl, :] + jnp.dot(
            wht_ref[sl, :], p.astype(jnp.bfloat16),
            preferred_element_type=jnp.float32)                # (Fout, TI)

    @pl.when(j == nj - 1)
    def _finalize():
        b = b_ref[...]                                         # (HF, 1)
        # allow_zero_in_degree=True: rows with no in-edges aggregate to 0.
        inv_l = 1.0 / jnp.maximum(l_ref[...], 1e-30)           # (H, TI)
        for hh in range(H):
            sl = slice(hh * Fout, (hh + 1) * Fout)
            rst = acc_ref[sl, :] * inv_l[hh:hh + 1, :] + b[sl, :]
            # ELU; expm1 on the clamped negative branch (no overflow).
            z_ref[sl, :] = jnp.where(rst > 0, rst,
                                     jnp.expm1(jnp.minimum(rst, 0.0)))
        # Fused SemanticAttention score for this row tile — z is still in VMEM,
        # so the semantic stage never re-reads it from HBM.
        hid = jnp.tanh(
            jnp.dot(w1t_ref[...], z_ref[...].astype(jnp.bfloat16),
                    preferred_element_type=jnp.float32) + b1_ref[...])  # (Hs, TI)
        s = jnp.sum(w2_ref[...] * hid, axis=0, keepdims=True)           # (1, TI)
        score_ref[...] += jnp.sum(s, axis=1, keepdims=True)             # (1, 1)


# ----------------------------------------------------------------------------
# Kernel C: beta-weighted combine over metapaths (z streamed from HBM once),
# destination-major so the multiply-add and store are lane-dense.
# ----------------------------------------------------------------------------
def _semantic_combine_kernel(beta_ref, z_ref, out_ref):
    P = z_ref.shape[0]
    acc = beta_ref[0:1, 0:1] * z_ref[0]
    for p in range(1, P):
        acc = acc + beta_ref[0:1, p:p + 1] * z_ref[p]
    out_ref[...] = acc


# ----------------------------------------------------------------------------
# One HANLayer (test_step): per-metapath multi-head GAT + semantic attention.
# ----------------------------------------------------------------------------
def gat_semantic_layer(x, adj_t, lp, *, ti=None, tj=None, tn=None):
    """x: (N, Fin). adj_t: (P, N, N) int8 with adj_t[p, s, d] != 0 iff edge
    s -> d in metapath p.  Returns the fused embedding (N, H*Fout)."""
    N, Fin = x.shape
    P = adj_t.shape[0]
    W, al, ar, b = lp["W"], lp["al"], lp["ar"], lp["b"]
    H, Fout = lp["H"], lp["Fout"]
    HF = H * Fout
    Hs = lp["semW1"].shape[-1]

    TI = ti or _pick_tile(N)
    TJ = tj or _pick_tile(N)
    TN = tn or _pick_tile(N)

    # ---- tiny wrapper-side precompute (once per layer) ----------------------
    # Fold the attention vectors through W (associativity):
    #   el = (h @ W) . a_l = h @ (W @ a_l^T),  er likewise with a_r.
    W_r = W.reshape(P, Fin, H, Fout)
    wal = jnp.einsum("pkhf,phf->pkh", W_r, al.reshape(P, H, Fout),
                     precision="highest")                       # (P, Fin, H)
    war = jnp.einsum("pkhf,phf->phk", W_r, ar.reshape(P, H, Fout),
                     precision="highest")                       # (P, H, Fin)

    bf = jnp.bfloat16
    h_bf, ht_bf = x.astype(bf), x.T.astype(bf)
    wt_bf = jnp.transpose(W, (0, 2, 1)).astype(bf)              # (P, HF, Fin)
    wal_bf, war_bf = wal.astype(bf), war.astype(bf)
    b_col = b.reshape(P, HF, 1)
    w1t_bf = lp["semW1"].T.astype(bf)                           # (Hs, HF)
    b1_col = lp["semb1"].reshape(Hs, 1)
    w2_col = lp["semw2"].reshape(Hs, 1)

    # ---- kernel A: projection + attention terms -----------------------------
    wht, el, er = pl.pallas_call(
        _gat_proj_kernel,
        out_shape=(jax.ShapeDtypeStruct((P, HF, N), bf),
                   jax.ShapeDtypeStruct((P, N, H), jnp.float32),
                   jax.ShapeDtypeStruct((P, H, N), jnp.float32)),
        grid=(P, N // TN),
        in_specs=[
            pl.BlockSpec((TN, Fin), lambda p, t: (t, 0)),
            pl.BlockSpec((Fin, TN), lambda p, t: (0, t)),
            pl.BlockSpec((None, HF, Fin), lambda p, t: (p, 0, 0)),
            pl.BlockSpec((None, Fin, H), lambda p, t: (p, 0, 0)),
            pl.BlockSpec((None, H, Fin), lambda p, t: (p, 0, 0)),
        ],
        out_specs=(
            pl.BlockSpec((None, HF, TN), lambda p, t: (p, 0, t)),
            pl.BlockSpec((None, TN, H), lambda p, t: (p, t, 0)),
            pl.BlockSpec((None, H, TN), lambda p, t: (p, 0, t)),
        ),
        compiler_params=_cparams(("parallel", "parallel")),
    )(h_bf, ht_bf, wt_bf, wal_bf, war_bf)

    # ---- kernel B: masked-softmax attention + aggregation + fused scores ----
    NI, NJ = N // TI, N // TJ
    cost = pl.CostEstimate(
        flops=int(P * (2 * N * N * HF + 6 * H * N * N)),
        transcendentals=int(P * H * N * N),
        bytes_accessed=int(adj_t.size + 2 * wht.size + 4 * P * N * HF),
    )
    z_t, scores = pl.pallas_call(
        functools.partial(_gat_attn_kernel, H=H, Fout=Fout),
        out_shape=(jax.ShapeDtypeStruct((P, HF, N), jnp.float32),
                   jax.ShapeDtypeStruct((P, 1, 1), jnp.float32)),
        grid=(P, NI, NJ),
        in_specs=[
            pl.BlockSpec((None, HF, TJ), lambda p, i, j: (p, 0, j)),   # Wh^T
            pl.BlockSpec((None, TJ, H), lambda p, i, j: (p, j, 0)),    # el (src)
            pl.BlockSpec((None, H, TI), lambda p, i, j: (p, 0, i)),    # er (dst)
            pl.BlockSpec((None, TJ, TI), lambda p, i, j: (p, j, i)),   # int8 adj^T
            pl.BlockSpec((None, HF, 1), lambda p, i, j: (p, 0, 0)),    # bias
            pl.BlockSpec((Hs, HF), lambda p, i, j: (0, 0)),            # sem W1^T
            pl.BlockSpec((Hs, 1), lambda p, i, j: (0, 0)),             # sem b1
            pl.BlockSpec((Hs, 1), lambda p, i, j: (0, 0)),             # sem w2
        ],
        out_specs=(
            pl.BlockSpec((None, HF, TI), lambda p, i, j: (p, 0, i)),   # z^T
            pl.BlockSpec((None, 1, 1), lambda p, i, j: (p, 0, 0)),     # score
        ),
        scratch_shapes=[
            pltpu.VMEM((H, TI), jnp.float32),    # running max
            pltpu.VMEM((H, TI), jnp.float32),    # running denominator
            pltpu.VMEM((HF, TI), jnp.float32),   # running numerator
        ],
        compiler_params=_cparams(("parallel", "arbitrary", "arbitrary")),
        cost_estimate=cost,
    )(wht, el, er, adj_t, b_col, w1t_bf, b1_col, w2_col)

    # ---- semantic softmax over P metapath scalars (plain-JAX glue) ----------
    beta = jax.nn.softmax(scores.reshape(P) / N).reshape(1, P)

    # ---- kernel C: streamed beta-weighted combine (single HBM read of z) ----
    x_t = pl.pallas_call(
        _semantic_combine_kernel,
        out_shape=jax.ShapeDtypeStruct((HF, N), jnp.float32),
        grid=(N // TN,),
        in_specs=[
            pl.BlockSpec((1, P), lambda t: (0, 0)),
            pl.BlockSpec((P, HF, TN), lambda t: (0, 0, t)),
        ],
        out_specs=pl.BlockSpec((HF, TN), lambda t: (0, t)),
        compiler_params=_cparams(("parallel",)),
    )(beta, z_t)
    return x_t.T


def han_apply(h, adj, layers, *, ti=None, tj=None, tn=None):
    """HAN.test_step dataflow over stacked HANLayers."""
    adj_t = jnp.transpose(adj, (0, 2, 1))          # adj_t[p, src, dst]
    x = h
    for lp in layers:
        x = gat_semantic_layer(x, adj_t, lp, ti=ti, tj=tj, tn=tn)
    return x


# ----------------------------------------------------------------------------
# Parameter construction (deterministic, synthetic).
# ----------------------------------------------------------------------------
def _xavier_normal(key, shape, gain):
    fan_in, fan_out = shape[-2], shape[-1]
    std = gain * (2.0 / (fan_in + fan_out)) ** 0.5
    return std * jax.random.normal(key, shape, jnp.float32)


def make_han_params(key, num_meta_paths, in_size, hidden_size, num_heads):
    P = num_meta_paths
    layers = []
    prev = in_size
    gain = 2.0 ** 0.5            # DGL GATConv gain=sqrt(2); SemanticAttention 1.414
    for H in num_heads:
        key, k_w, k_al, k_ar, k_b, k_s1, k_b1, k_s2 = jax.random.split(key, 8)
        Fout = hidden_size
        HF = H * Fout
        layers.append(dict(
            H=H, Fout=Fout,
            W=_xavier_normal(k_w, (P, prev, HF), gain),      # heads fused on lanes
            al=_xavier_normal(k_al, (P, 1, HF), gain),
            ar=_xavier_normal(k_ar, (P, 1, HF), gain),
            b=0.1 * jax.random.normal(k_b, (P, 1, HF), jnp.float32),
            semW1=_xavier_normal(k_s1, (HF, 128), 1.414),
            semb1=0.1 * jax.random.normal(k_b1, (1, 128), jnp.float32),
            semw2=_xavier_normal(k_s2, (1, 128), 1.414),     # row form of (128, 1)
        ))
        prev = HF
    return layers


# ----------------------------------------------------------------------------
# Pure-JAX reference (same math, un-fused / un-tiled, f32) for correctness.
# ----------------------------------------------------------------------------
def _gat_reference(x, adj, W, al, ar, b, H, Fout):
    P = adj.shape[0]
    outs = []
    for p in range(P):
        mask = adj[p] > 0
        heads = []
        for hh in range(H):
            sl = slice(hh * Fout, (hh + 1) * Fout)
            Wh = x @ W[p][:, sl]                                  # (N, Fout)
            el = jnp.sum(Wh * al[p, :, sl], axis=-1)              # (N,)
            er = jnp.sum(Wh * ar[p, :, sl], axis=-1)              # (N,)
            e = er[:, None] + el[None, :]
            e = jnp.where(e > 0, e, 0.2 * e)
            e = jnp.where(mask, e, -1e30)
            e = e - jnp.max(e, axis=-1, keepdims=True)
            pm = jnp.where(mask, jnp.exp(e), 0.0)
            alpha = pm / jnp.maximum(jnp.sum(pm, axis=-1, keepdims=True), 1e-30)
            rst = alpha @ Wh + b[p, :, sl]
            heads.append(jnp.where(rst > 0, rst, jnp.expm1(jnp.minimum(rst, 0.0))))
        outs.append(jnp.concatenate(heads, axis=-1))
    return jnp.stack(outs, axis=0)


def _semantic_reference(z, W1, b1, w2_row):
    P, N, D = z.shape
    hid = jnp.tanh(z @ W1 + b1)                     # (P, N, Hs)
    s = jnp.sum(hid * w2_row, axis=-1)              # (P, N)
    beta = jax.nn.softmax(jnp.mean(s, axis=1))      # (P,)
    return jnp.tensordot(beta, z, axes=1)           # (N, D)


def han_reference(h, adj, layers):
    x = h
    for lp in layers:
        z = _gat_reference(x, adj, lp["W"], lp["al"], lp["ar"], lp["b"],
                           lp["H"], lp["Fout"])
        x = _semantic_reference(z, lp["semW1"], lp["semb1"], lp["semw2"])
    return x


if __name__ == "__main__":
    key = jax.random.PRNGKey(0)

    # Small, module-consistent shapes; N=256 with 128-wide tiles exercises the
    # multi-block (NI = NJ = NT = 2) paths of every kernel.
    P = 2                      # metapaths
    N = 256                    # nodes
    in_size = 64
    hidden_size = 8
    num_heads = [2, 2]         # two HAN layers

    key, k_h, k_adj, k_p = jax.random.split(key, 4)
    h = jax.random.normal(k_h, (N, in_size), jnp.float32)

    # int8 dense adjacency per metapath (random sparse mask + self loops).
    # adj[p, i, j] = 1  <=>  edge j -> i in metapath p's reachable graph.
    rnd = jax.random.uniform(k_adj, (P, N, N))
    adj = (rnd < 0.1).astype(jnp.int8)
    adj = jnp.maximum(adj, jnp.eye(N, dtype=jnp.int8)[None, :, :])

    params = make_han_params(k_p, P, in_size, hidden_size, num_heads)

    out = jax.block_until_ready(han_apply(h, adj, params, ti=128, tj=128, tn=128))

    with jax.default_matmul_precision("highest"):
        ref = jax.block_until_ready(han_reference(h, adj, params))

    assert out.shape == (N, hidden_size * num_heads[-1])
    assert bool(jnp.all(jnp.isfinite(out)))
    max_err = float(jnp.max(jnp.abs(out - ref)))
    # Kernels use bf16 MXU operands (f32 accumulate); reference is f32-"highest".
    assert bool(jnp.allclose(out, ref, rtol=5e-2, atol=5e-2)), f"max err {max_err}"
    print("KERNEL_OK")
</pallas_src>

<mosaic_0001>
module attributes {stable_mosaic.version = 11 : i64} {
  func.func @_gat_proj_kernel(%arg0: i32, %arg1: i32, %arg2: memref<128x64xbf16, #tpu.memory_space<vmem>>, %arg3: memref<64x128xbf16, #tpu.memory_space<vmem>>, %arg4: memref<1x16x64xbf16, #tpu.memory_space<vmem>>, %arg5: memref<1x64x2xbf16, #tpu.memory_space<vmem>>, %arg6: memref<1x2x64xbf16, #tpu.memory_space<vmem>>, %arg7: memref<1x16x128xbf16, #tpu.memory_space<vmem>>, %arg8: memref<1x128x2xf32, #tpu.memory_space<vmem>>, %arg9: memref<1x2x128xf32, #tpu.memory_space<vmem>>) attributes {dimension_semantics = [#tpu.dimension_semantics<parallel>, #tpu.dimension_semantics<parallel>], iteration_bounds = array<i64: 2, 2>, scalar_prefetch = 0 : i64, scratch_operands = 0 : i64, tpu.core_type = #tpu.core_type<tc>, window_params = [{transform_indices = @transform_0, window_bounds = array<i64: 128, 64>}, {transform_indices = @transform_1, window_bounds = array<i64: 64, 128>}, {transform_indices = @transform_2, window_bounds = array<i64: 1, 16, 64>}, {transform_indices = @transform_3, window_bounds = array<i64: 1, 64, 2>}, {transform_indices = @transform_4, window_bounds = array<i64: 1, 2, 64>}, {transform_indices = @transform_5, window_bounds = array<i64: 1, 16, 128>}, {transform_indices = @transform_6, window_bounds = array<i64: 1, 128, 2>}, {transform_indices = @transform_7, window_bounds = array<i64: 1, 2, 128>}]} {
    %c0 = arith.constant 0 : index
    %c0_0 = arith.constant 0 : index
    %c0_1 = arith.constant 0 : index
    %0 = vector.load %arg4[%c0, %c0_0, %c0_1] : memref<1x16x64xbf16, #tpu.memory_space<vmem>>, vector<1x16x64xbf16>
    %1 = vector.shape_cast %0 : vector<1x16x64xbf16> to vector<16x64xbf16>
    %c0_2 = arith.constant 0 : index
    %c0_3 = arith.constant 0 : index
    %2 = vector.load %arg3[%c0_2, %c0_3] : memref<64x128xbf16, #tpu.memory_space<vmem>>, vector<64x128xbf16>
    %cst = arith.constant dense<0.000000e+00> : vector<16x128xf32>
    %3 = tpu.matmul %1, %2, %cst {dimension_numbers = #tpu.dot_dimension_numbers<[1], [0], [0], [1], [0, 0, 1, 1], [], []>} : vector<16x64xbf16>, vector<64x128xbf16>, vector<16x128xf32> -> vector<16x128xf32>
    %4 = arith.truncf %3 : vector<16x128xf32> to vector<16x128xbf16>
    %c0_4 = arith.constant 0 : index
    %c0_5 = arith.constant 0 : index
    %c0_6 = arith.constant 0 : index
    %5 = vector.load %arg7[%c0_4, %c0_5, %c0_6] : memref<1x16x128xbf16, #tpu.memory_space<vmem>>, vector<1x16x128xbf16>
    %6 = vector.shape_cast %5 : vector<1x16x128xbf16> to vector<16x128xbf16>
    %7 = vector.shape_cast %4 : vector<16x128xbf16> to vector<1x16x128xbf16>
    tpu.vector_store %arg7[%c0_4, %c0_5, %c0_6], %7 {strides = array<i32>} : memref<1x16x128xbf16, #tpu.memory_space<vmem>>, vector<1x16x128xbf16>,
    %c0_7 = arith.constant 0 : index
    %c0_8 = arith.constant 0 : index
    %c0_9 = arith.constant 0 : index
    %8 = vector.load %arg6[%c0_7, %c0_8, %c0_9] : memref<1x2x64xbf16, #tpu.memory_space<vmem>>, vector<1x2x64xbf16>
    %9 = vector.shape_cast %8 : vector<1x2x64xbf16> to vector<2x64xbf16>
    %c0_10 = arith.constant 0 : index
    %c0_11 = arith.constant 0 : index
    %10 = vector.load %arg3[%c0_10, %c0_11] : memref<64x128xbf16, #tpu.memory_space<vmem>>, vector<64x128xbf16>
    %cst_12 = arith.constant dense<0.000000e+00> : vector<2x128xf32>
    %11 = tpu.matmul %9, %10, %cst_12 {dimension_numbers = #tpu.dot_dimension_numbers<[1], [0], [0], [1], [0, 0, 1, 1], [], []>} : vector<2x64xbf16>, vector<64x128xbf16>, vector<2x128xf32> -> vector<2x128xf32>
    %c0_13 = arith.constant 0 : index
    %c0_14 = arith.constant 0 : index
    %c0_15 = arith.constant 0 : index
    %12 = vector.load %arg9[%c0_13, %c0_14, %c0_15] : memref<1x2x128xf32, #tpu.memory_space<vmem>>, vector<1x2x128xf32>
    %13 = vector.shape_cast %12 : vector<1x2x128xf32> to vector<2x128xf32>
    %14 = vector.shape_cast %11 : vector<2x128xf32> to vector<1x2x128xf32>
    tpu.vector_store %arg9[%c0_13, %c0_14, %c0_15], %14 {strides = array<i32>} : memref<1x2x128xf32, #tpu.memory_space<vmem>>, vector<1x2x128xf32>,
    %c0_16 = arith.constant 0 : index
    %c0_17 = arith.constant 0 : index
    %15 = vector.load %arg2[%c0_16, %c0_17] : memref<128x64xbf16, #tpu.memory_space<vmem>>, vector<128x64xbf16>
    %c0_18 = arith.constant 0 : index
    %c0_19 = arith.constant 0 : index
    %c0_20 = arith.constant 0 : index
    %16 = vector.load %arg5[%c0_18, %c0_19, %c0_20] : memref<1x64x2xbf16, #tpu.memory_space<vmem>>, vector<1x64x2xbf16>
    %17 = vector.shape_cast %16 : vector<1x64x2xbf16> to vector<64x2xbf16>
    %cst_21 = arith.constant dense<0.000000e+00> : vector<128x2xf32>
    %18 = tpu.matmul %15, %17, %cst_21 {dimension_numbers = #tpu.dot_dimension_numbers<[1], [0], [0], [1], [0, 0, 1, 1], [], []>} : vector<128x64xbf16>, vector<64x2xbf16>, vector<128x2xf32> -> vector<128x2xf32>
    %c0_22 = arith.constant 0 : index
    %c0_23 = arith.constant 0 : index
    %c0_24 = arith.constant 0 : index
    %19 = vector.load %arg8[%c0_22, %c0_23, %c0_24] : memref<1x128x2xf32, #tpu.memory_space<vmem>>, vector<1x128x2xf32>
    %20 = vector.shape_cast %19 : vector<1x128x2xf32> to vector<128x2xf32>
    %21 = vector.shape_cast %18 : vector<128x2xf32> to vector<1x128x2xf32>
    tpu.vector_store %arg8[%c0_22, %c0_23, %c0_24], %21 {strides = array<i32>} : memref<1x128x2xf32, #tpu.memory_space<vmem>>, vector<1x128x2xf32>,
    return
  }
  func.func @transform_0(%arg0: i32, %arg1: i32) -> (i32, i32) {
    %c0_i32 = arith.constant 0 : i32
    %c0_i32_0 = arith.constant 0 : i32
    return %arg1, %c0_i32 : i32, i32
  }
  func.func @transform_1(%arg0: i32, %arg1: i32) -> (i32, i32) {
    %c0_i32 = arith.constant 0 : i32
    %c0_i32_0 = arith.constant 0 : i32
    return %c0_i32, %arg1 : i32, i32
  }
  func.func @transform_2(%arg0: i32, %arg1: i32) -> (i32, i32, i32) {
    %c0_i32 = arith.constant 0 : i32
    %c0_i32_0 = arith.constant 0 : i32
    %c0_i32_1 = arith.constant 0 : i32
    return %arg0, %c0_i32, %c0_i32_0 : i32, i32, i32
  }
  func.func @transform_3(%arg0: i32, %arg1: i32) -> (i32, i32, i32) {
    %c0_i32 = arith.constant 0 : i32
    %c0_i32_0 = arith.constant 0 : i32
    %c0_i32_1 = arith.constant 0 : i32
    return %arg0, %c0_i32, %c0_i32_0 : i32, i32, i32
  }
  func.func @transform_4(%arg0: i32, %arg1: i32) -> (i32, i32, i32) {
    %c0_i32 = arith.constant 0 : i32
    %c0_i32_0 = arith.constant 0 : i32
    %c0_i32_1 = arith.constant 0 : i32
    return %arg0, %c0_i32, %c0_i32_0 : i32, i32, i32
  }
  func.func @transform_5(%arg0: i32, %arg1: i32) -> (i32, i32, i32) {
    %c0_i32 = arith.constant 0 : i32
    %c0_i32_0 = arith.constant 0 : i32
    return %arg0, %c0_i32, %arg1 : i32, i32, i32
  }
  func.func @transform_6(%arg0: i32, %arg1: i32) -> (i32, i32, i32) {
    %c0_i32 = arith.constant 0 : i32
    %c0_i32_0 = arith.constant 0 : i32
    return %arg0, %arg1, %c0_i32 : i32, i32, i32
  }
  func.func @transform_7(%arg0: i32, %arg1: i32) -> (i32, i32, i32) {
    %c0_i32 = arith.constant 0 : i32
    %c0_i32_0 = arith.constant 0 : i32
    return %arg0, %c0_i32, %arg1 : i32, i32, i32
  }
}

</mosaic_0001>

<bundles_post_ra>
// kernel: tpu_custom_call.1
= control target key start
LH: loop header
LB: loop body
LE: loop exit
PB: predicated region body
PF: predicated region fallthrough
CT: control target
= control target key end

     0   :  { %s1873_s0 = inlined_call_operand.vmem [shape: bf16[256,64], index: 0, kind: input, shape index: {}]   ;;  %s1874_s1 = inlined_call_operand.vmem [shape: bf16[64,256], index: 1, kind: input, shape index: {}]   ;;  %s1875_s2 = inlined_call_operand.vmem [shape: bf16[2,16,64], index: 2, kind: input, shape index: {}]   ;;  %s1876_s3 = inlined_call_operand.vmem [shape: bf16[2,64,2], index: 3, kind: input, shape index: {}]   ;;  %s1877_s4 = inlined_call_operand.vmem [shape: bf16[2,2,64], index: 4, kind: input, shape index: {}]   ;;  %s1878_s5 = inlined_call_operand.hbm [shape: bf16[2,16,256], index: 5, kind: output, shape index: {0}]   ;;  %s1879_s6 = inlined_call_operand.vmem [shape: f32[2,256,2], index: 6, kind: output, shape index: {1}]   ;;  %s1880_s7 = inlined_call_operand.hbm [shape: f32[2,2,256], index: 7, kind: output, shape index: {2}]  }
   0x1   :  { %1885 = sst [smem:[#allocation13_spill]] %s1873_s0 }
   0x2   :  { %1886 = sst [smem:[#allocation14_spill]] %s1874_s1 }
   0x3   :  { %1887 = sst [smem:[#allocation15_spill]] %s1875_s2 }
   0x4   :  { %13 = vsyncpa [#allocation4], 0 }
   0x5   :  { %15 = vsyncpa [#allocation4 + $0x1], 0 }
   0x6   :  { %16 = vsyncpa [#allocation6], 0 }
   0x7   :  { %18 = vsyncpa [#allocation6 + $0x1], 0  ;;  %s1563_s24 = smov 0   ;;  %s1565_s25 = smov 0  }
   0x8   :  { %s1567_s26 = smov 0   ;;  %s1569_s27 = smov 0  }
   0x9   :  { %s1571_s28 = smov 0   ;;  %s1573_s29 = smov 0  }
   0xa   :  { %s1575_s30 = smov 0   ;;  %s1577_s8 = smov 0  }
   0xb   :  { %s1579_s9 = smov 0   ;;  %s1581_s10 = smov 0  }
   0xc LB: > { %1888 = sst [smem:[#allocation9_spill]] %s1506_s8  ;;  %s1115_s11 = sadd.s32 4294967295, %s1514_s10   ;;  %s1514_s10 = sphi %s1581_s10, %s24_s10   ;;  %s1510_s9 = sphi %s1579_s9, %s1901_s9   ;;  %s1506_s8 = sphi %s1577_s8, %s1900_s8   ;;  %s1502_s30 = sphi %s1575_s30, %s1899_s30   ;;  %s1498_s29 = sphi %s1573_s29, %s1898_s29   ;;  %s1494_s28 = sphi %s1571_s28, %s1906_s28   ;;  %s1490_s27 = sphi %s1569_s27, %s1905_s27   ;;  %s1486_s26 = sphi %s1567_s26, %s1904_s26   ;;  %s1482_s25 = sphi %s1565_s25, %s1903_s25   ;;  %s1478_s24 = sphi %s1563_s24, %s1902_s24  }
   0xd   : > { %1889 = sst [smem:[#allocation10_spill]] %s1510_s9  ;;  %s1116_s12 = sadd.s32 4294967294, %s1514_s10  }
   0xe   : > { %s33_s13 = sadd.s32 1, %s1506_s8  ;;  %s36_s14 = sadd.s32 1, %s1510_s9 }
   0xf   : > { %p34_p0 = scmp.ge.s32.totalorder %s33_s13, 2  ;;  %s69_s15 = sadd.s32 1, %s1494_s28 }
  0x10   : > { %p76_p1 = scmp.ne.s32.totalorder %s1494_s28, %s1490_s27  ;;  %p77_p2 = scmp.eq.s32.totalorder %s1514_s10, 0 }
  0x11   : > { %s1908_s13 = smov (%p34_p0, %s33_s13), 0  ;;  %s1910_s14 = smov (!%p34_p0, %s36_s14), %s1510_s9 }
  0x12   : > { %1890 = sst [smem:[#allocation11_spill]] %s1908_s13  ;;  %s66_s16 = ssub.s32 %s1506_s8, %s1908_s13 }
  0x13   : > { %p1626_p3 = por %p77_p2, %p76_p1  ;;  %p38_p4 = scmp.ge.s32.totalorder %s1910_s14, 2 }
  0x14   : > { %p67_p5 = scmp.eq.s32.totalorder %s66_s16, 0  ;;  %s175_s18 = sadd.s32 1, %s1486_s26 }
  0x15   : > { %p185_p6 = scmp.ne.s32.totalorder %s1486_s26, %s1482_s25  ;;  %s1912_s14 = smov (%p38_p4, %s1910_s14), 0 }
  0x16   : > { %1892 = sst [smem:[#allocation12_spill]] %s1912_s14  ;;  %s170_s20 = ssub.s32 %s1510_s9, %s1912_s14 }
  0x17   : > { %s1636_s19 = scalar_select %p67_p5, %s1494_s28, %s69_s15  }
  0x18   : > { %p186_p7 = scmp.eq.s32.totalorder %s1115_s11, 3  ;;  %s172_s21 = sor.u32 %s170_s20, %s66_s16 }
  0x19   : > { %p191_p8 = scmp.ne.s32.totalorder %s1482_s25, %s1478_s24  ;;  %p173_p9 = scmp.eq.s32.totalorder %s172_s21, 0 }
  0x1a   : > { %p1642_p10 = por %p186_p7, %p185_p6  ;;  %p192_p11 = scmp.eq.s32.totalorder %s1116_s12, 3 }
  0x1b   : > { %s1647_s23 = scalar_select %p173_p9, %s1486_s26, %s175_s18  }
  0x1c   : > { %p1649_p12 = por %p192_p11, %p191_p8  ;;  %p1118_p13 = scmp.ge.s32.totalorder %s1514_s10, 4 }
  0x1e   : > { %264 = sbr.rel (%p1118_p13) target bundleno = 52 (0x34), region = 16 }
  0x25   : > { %276 = sbr.rel (!%p1626_p3) target bundleno = 52 (0x34), region = 24  ;;  %s278_s11 = sand.u32 (%p1626_p3), 1, %s1494_s28  }
  0x26   : > { %s1120_s15 = sshll.u32 (%p1626_p3), %s1506_s8, 2  ;;  %s1119_s16 = sshll.u32 (%p1626_p3), %s278_s11, 5 }
  0x27   : > { %s1895_s1 = sld [smem:[#allocation14_spill]] (%p1626_p3)  ;;  %s280_s18 = scalar_lea.vmem (%p1626_p3), [#allocation2], %s1119_s16 }
  0x2d   : > { %s282_s12 = scalar_lea.vmem %s1895_s1, %s1120_s15 }
  0x2e   : > { %v298_v0 = vld [vmem:[%s282_s12] sm:$0xf]  ;;  %v300_v1 = vld [vmem:[%s282_s12 + $0x8] sm:$0xf]  ;;  %v302_v2 = vld [vmem:[%s282_s12 + $0x10] sm:$0xf] }
  0x2f   : > { %299 = vst [vmem:[%s280_s18] sm:$0xf] %v298_v0  ;;  %301 = vst [vmem:[%s280_s18 + $0x4] sm:$0xf] %v300_v1  ;;  %v304_v3 = vld [vmem:[%s282_s12 + $0x18] sm:$0xf] }
  0x30   : > { %v306_v4 = vld [vmem:[%s282_s12 + $0x20] sm:$0xf]  ;;  %303 = vst [vmem:[%s280_s18 + $0x8] sm:$0xf] %v302_v2  ;;  %305 = vst [vmem:[%s280_s18 + $0xc] sm:$0xf] %v304_v3 }
  0x31   : > { %307 = vst [vmem:[%s280_s18 + $0x10] sm:$0xf] %v306_v4  ;;  %v308_v5 = vld [vmem:[%s282_s12 + $0x28] sm:$0xf]  ;;  %v310_v6 = vld [vmem:[%s282_s12 + $0x30] sm:$0xf] }
  0x32   : > { %v312_v7 = vld [vmem:[%s282_s12 + $0x38] sm:$0xf]  ;;  %309 = vst [vmem:[%s280_s18 + $0x14] sm:$0xf] %v308_v5  ;;  %311 = vst [vmem:[%s280_s18 + $0x18] sm:$0xf] %v310_v6 }
  0x33   : > { %313 = vst [vmem:[%s280_s18 + $0x1c] sm:$0xf] %v312_v7 }
  0x34 PF: > { %p1121_p0 = scmp.ge.s32.totalorder %s1514_s10, 1  ;;  %p373_p1 = scmp.lt.s32.totalorder %s1514_s10, 5 }
  0x36   : > { %p374_p2 = pnand %p1121_p0, %p373_p1 }
  0x37   : > { %s1125_s17 = sshll.u32 (!%p374_p2), %s1498_s29, 4  ;;  %p449_p3 = scmp.lt.s32.totalorder (!%p374_p2), %s1502_s30, 1  ;;  %v1516_v8 = vmov (!%p374_p2), 0.0   ;;  %vm1517_vm0 = vmmov (!%p374_p2), 0   ;;  %vm512_vm1 = vcmask (!%p374_p2), 523264   ;;  %vm853_vm2 = vcmask (!%p374_p2), 15360  }
  0x38   : > { %377 = sbr.rel (%p374_p2) target bundleno = 348 (0x15c), region = 77  ;;  %p444_p4 = scmp.lt.s32.totalorder (!%p374_p2), %s1125_s17, 31  ;;  %1206 = vmatprep.subr.bf16.mxu1 (!%p374_p2), %v1516_v8  ;;  %1214 = vmatprep.mubr.msk.bf16.mxu1 (!%p374_p2), %vm1517_vm0, %v1516_v8 }
  0x39   : > { %s380_s11 = sand.u32 (!%p374_p2), 1, %s1490_s27   ;;  %s1896_s0 = sld [smem:[#allocation13_spill]] (!%p374_p2) }
  0x3a   : > { %s1122_s18 = sshll.u32 (!%p374_p2), %s380_s11, 5  ;;  %s1897_s2 = sld [smem:[#allocation15_spill]] (!%p374_p2) }
  0x3b   : > { %s1678_s27 = scalar_lea.vmem (!%p374_p2), [#allocation2], %s1122_s18 }
  0x3c   : > { %v1353_v11 = vld [vmem:[%s1678_s27] sm:$0xff] (!%p374_p2)   ;;  %v1355_v13 = vld [vmem:[%s1678_s27 + $0x8] sm:$0xff] (!%p374_p2)   ;;  %v1357_v16 = vld [vmem:[%s1678_s27 + $0x10] sm:$0xff] (!%p374_p2)  }
  0x3d   : > { %1207 = vmatpush3.bf16.msra.mxu1 (!%p374_p2), %v1353_v11  ;;  %v1360_v17 = vld [vmem:[%s1678_s27 + $0x18] sm:$0xff] (!%p374_p2)   ;;  %v1362_v21 = vld [vmem:[%s1678_s27] sm:$0xff] (!%p374_p2)   ;;  %v1365_v22 = vld [vmem:[%s1678_s27 + $0x8] sm:$0xff] (!%p374_p2)  }
  0x3e   : > { %1208 = vmatprep.subr.bf16.mxu1 (!%p374_p2), %v1516_v8  ;;  %v1366_v25 = vld [vmem:[%s1678_s27 + $0x10] sm:$0xff] (!%p374_p2)   ;;  %v1369_v26 = vld [vmem:[%s1678_s27 + $0x18] sm:$0xff] (!%p374_p2)   ;;  %s1169_s27 = sshll.u32 (!%p374_p2), %s1502_s30, 2 }
  0x3f   : > { %s1670_s15 = scalar_select %p449_p3, %s1502_s30, 1 }
  0x40   : > { %s1914_s17 = smov (!%p444_p4, %s1125_s17), 31 }
  0x41   : > { %s1176_s16 = sshll.u32 %s1670_s15, 5  ;;  %s1126_s14 = sshll.u32 %s1914_s17, 2  ;;  %1209 = vmatpush3.bf16.msra.mxu1 %v1355_v13 }
  0x42   : > { %s458_s12 = scalar_lea.vmem %s1876_s3, %s1176_s16  ;;  %s1676_s1 = sadd.s32 %s1176_s16, %s1914_s17  ;;  %1210 = vmatprep.subr.bf16.mxu1 %v1516_v8 }
  0x43   : > { %v1351_v9 = vld [vmem:[%s458_s12] sm:$0xff]   ;;  %v1352_v10 = vld [vmem:[%s458_s12 + $0x8] sm:$0xff]   ;;  %s1684_s20 = scalar_lea.vmem %s1896_s0, %s1126_s14  ;;  %v1354_v12 = vld [vmem:[%s458_s12 + $0x10] sm:$0xff]   ;;  %s1175_s17 = sshll.u32 %s1670_s15, 3 }
  0x44   : > { %1230 = vmatprep.subr.bf16.mxu0 %v1351_v9  ;;  %v1358_v14 = vld [vmem:[%s1684_s20] sm:$0xff]   ;;  %v1356_v15 = vld [vmem:[%s458_s12 + $0x18] sm:$0xff]   ;;  %s453_s14 = scalar_lea.vmem %s1897_s2, %s1175_s17  ;;  %v1359_v18 = vld [vmem:[%s1684_s20 + $0x8] sm:$0xff]   ;;  %s461_s21 = scalar_lea.vmem %s1877_s4, %s1670_s15 }
  0x45   : > { %1231 = vmatpush3.bf16.msra.mxu0 %v1351_v9  ;;  %1238 = vmatprep.mubr.msk.bf16.mxu0 %vm512_vm1, %v1358_v14  ;;  %v1363_v19 = vld [vmem:[%s1684_s20 + $0x10] sm:$0xff]   ;;  %v1361_v20 = vld [vmem:[%s453_s14] sm:$0xff]   ;;  %v1364_v23 = vld [vmem:[%s1684_s20 + $0x18] sm:$0xff]   ;;  %s1729_s12 = sand.u32 1, %s1482_s25   ;;  %s1133_s18 = sshll.u32 %s1676_s1, 3 }
  0x46   : > { %1232 = vmatprep.subr.bf16.mxu0 %v1352_v10  ;;  %1211 = vmatpush3.bf16.msra.mxu1 %v1357_v16  ;;  %v1367_v24 = vld [vmem:[%s1684_s20 + $0x20] sm:$0xff]   ;;  %v1368_v27 = vld [vmem:[%s1684_s20 + $0x28] sm:$0xff]   ;;  %v1370_v28 = vld [vmem:[%s1684_s20 + $0x30] sm:$0xff]   ;;  %s1123_s17 = sshll.u32 %s1729_s12, 3  ;;  %s1737_s9 = scalar_lea.vmem %s1879_s6, %s1133_s18 }
  0x47   : > { %1212 = vmatprep.subr.bf16.mxu1 %v1516_v8  ;;  %v567_v29 = vld [vmem:[%s461_s21] sm:$0x1]  ;;  %v1371_v30 = vld [vmem:[%s1684_s20 + $0x38] sm:$0xff]   ;;  %s896_s14 = sadd.s32 %s1498_s29, %s1169_s27  ;;  %s424_s20 = scalar_lea.vmem [#allocation3], %s1123_s17 }
  0x48   : > { %s899_s11 = sshll.u32 %s424_s20, 4  ;;  %s1170_s1 = sshll.u32 %s896_s14, 6  ;;  %s1746_s11 = int_to_ptr.vmem [resolvable:$true] %s899_s11 }
  0x49   : > { %1233 = vmatpush3.bf16.msra.mxu0 %v1352_v10  ;;  %s1753_s18 = scalar_lea.hbm %s1878_s5, %s1170_s1  ;;  %s1124_s27 = sshll.u32 %s1729_s12, 1 }
  0x4a   : > { %1234 = vmatprep.subr.bf16.mxu0 %v1354_v12  ;;  %1213 = vmatpush3.bf16.msra.mxu1 %v1360_v17  ;;  %s1171_s17 = sshll.u32 %s1502_s30, 1  ;;  %s871_s8 = scalar_lea.sflag [#allocation4], %s1729_s12 }
  0x4b   : > { %1218 = vmatprep.subr.bf16.mxu1 %v1516_v8  ;;  %s1372_s15 = scalar_lea.vmem %s1746_s11, 128  ;;  %s1518_s14 = smov [#allocation3]  }
  0x4c   : > { %p1373_p5 = scmp.ne.s32.totalorder %s1746_s11, %s1372_s15  ;;  %s1376_s0 = sshll.u32 %s1518_s14, 4  ;;  %s1377_s0 = int_to_ptr.vmem [resolvable:$false] %s1376_s0 }
  0x4d   : > { %1235 = vmatpush3.bf16.msra.mxu0 %v1354_v12  ;;  %1215 = vmatmul.mubr.msk.bf16.vlgmr.msra.gmra.mrb[0].mxu1 %vm512_vm1, %v1361_v20  ;;  %s1378_s2 = scalar_lea.vmem %s1377_s0, 256  ;;  %p1379_p8 = scmp.lt.s32.totalorder %s1746_s11, %s1377_s0 }
  0x4e   : > { %1236 = vmatprep.subr.bf16.mxu0 %v1356_v15  ;;  %1219 = vmatpush3.bf16.msra.mxu1 %v1362_v21  ;;  %p1374_p6 = pnand %p1373_p5, %p1642_p10  ;;  %p1380_p9 = scmp.lt.s32.totalorder %s1378_s2, %s1372_s15 }
  0x4f   : > { %1226 = vmatprep.mubr.msk.bf16.mxu1 %vm1517_vm0, %v1516_v8  ;;  %1220 = vmatprep.subr.bf16.mxu1 %v1516_v8 }
  0x50   : > { %p1375_p7 = pneg %p1374_p6  ;;  %p1381_p11 = por %p1380_p9, %p1379_p8 }
  0x51   : > { %1237 = vmatpush3.bf16.msra.mxu0 %v1356_v15 }
  0x52   : > { %1221 = vmatpush3.bf16.msra.mxu1 %v1365_v22  ;;  %p1382_p13 = pnand %p1381_p11, %p1375_p7 }
  0x53   : > { %1222 = vmatprep.subr.bf16.mxu1 %v1516_v8 }
  0x54   : > { %1239 = vmatmul.mubr.msk.bf16.vlgmr.msra.gmra.mrb[0].mxu0 %vm512_vm1, %v1359_v18 }
  0x55   : > { %1242 = vmatprep.mubr.msk.bf16.mxu0 %vm512_vm1, %v1363_v19 }
  0x56   : > { %1223 = vmatpush3.bf16.msra.mxu1 %v1366_v25 }
  0x57   : > { %1224 = vmatprep.subr.bf16.mxu1 %v1516_v8 }
  0x5a   : > { %1225 = vmatpush3.bf16.msra.mxu1 %v1369_v26 }
  0x5c   : > { %1243 = vmatmul.mubr.msk.bf16.gmra.mrb[4].mxu0 %vm512_vm1, %v1364_v23 }
  0x5d   : > { %1246 = vmatprep.mubr.msk.bf16.mxu0 %vm512_vm1, %v1367_v24  ;;  %1227 = vmatmul.mubr.msk.bf16.vlgmr.msra.gmra.mrb[4].mxu1 %vm512_vm1, %v567_v29 }
  0x64   : > { %1247 = vmatmul.mubr.msk.bf16.gmra.mrb[8].mxu0 %vm512_vm1, %v1368_v27 }
  0x65   : > { %1250 = vmatprep.mubr.msk.bf16.mxu0 %vm512_vm1, %v1370_v28 }
  0x6c   : > { %1251 = vmatmul.mubr.msk.bf16.gmra.mrb[12].mxu0 %vm512_vm1, %v1371_v30 }
 0x120   : > { %v550_v34 = vpop.f32.mrb[0].mxu1 }
 0x121   : > { %v1216_v36 = vpop.f32.mrb[1].mxu1 }
 0x122   : > { %v553_v37 = vpop.f32.mrb[2].mxu1 }
 0x123   : > { %v1182_v38 = vpack.c.bf16 %v553_v37, %v550_v34  ;;  %v1217_v39 = vpop.f32.mrb[3].mxu1 }
 0x125   : > { %1183 = vst [vmem:[%s424_s20] sm:$0xff] %v1182_v38  }
 0x127   : > { %v1240_v31 = vpop.f32.mrb[0].mxu0 }
 0x128   : > { %856 = vst.msk [vmem:[%s1737_s9 + $0x10] sm:$0xff] %vm853_vm2, %v1240_v31  ;;  %v790_v32 = vpop.f32.mrb[1].mxu0 }
 0x129   : > { %854 = vst.msk [vmem:[%s1737_s9] sm:$0xff] %vm853_vm2, %v790_v32  ;;  %v1241_v33 = vpop.f32.mrb[2].mxu0 }
 0x12a   : > { %857 = vst.msk [vmem:[%s1737_s9 + $0x18] sm:$0xff] %vm853_vm2, %v1241_v33  ;;  %v793_v35 = vpop.f32.mrb[3].mxu0 }
 0x12b   : > { %855 = vst.msk [vmem:[%s1737_s9 + $0x8] sm:$0xff] %vm853_vm2, %v793_v35 }
 0x12f   : > { %v1244_v40 = vpop.f32.mrb[4].mxu0 }
 0x130   : > { %1385 = shalt.err (!%p1382_p13)
}
 0x131   : > { %s1386_s20 = scalar_lea.hbm %s1753_s18, 128  ;;  %s1390_s21 = scalar_lea.hbm %s1878_s5, 512 }
 0x132   : > { %p1387_p0 = scmp.ne.s32.totalorder %s1753_s18, %s1386_s20  ;;  %p1391_p3 = scmp.lt.u32.totalorder %s1753_s18, %s1878_s5 }
 0x133   : > { %p1392_p4 = scmp.lt.u32.totalorder %s1390_s21, %s1386_s20  ;;  %p1394_p6 = scmp.lt.u32.totalorder %s1386_s20, %s1753_s18 }
 0x134   : > { %p1388_p1 = pnand %p1387_p0, %p1642_p10 }
 0x135   : > { %p1393_p5 = por %p1392_p4, %p1391_p3 }
 0x136   : > { %p1389_p2 = pneg %p1388_p1 }
 0x137   : > { %p1395_p7 = por %p1394_p6, %p1393_p5 }
 0x139   : > { %p1396_p8 = pnand %p1395_p7, %p1389_p2 }
 0x13b   : > { %1399 = shalt.err (!%p1396_p8)
}
 0x13c   : > { %s1519_s2 = smov 64   ;;  %s1520_s15 = smov 128   ;;  %860 = vst.msk [vmem:[%s1737_s9 + $0x30] sm:$0xff] %vm853_vm2, %v1244_v40  ;;  %v806_v41 = vpop.f32.mrb[5].mxu0  ;;  %v637_v47 = vpop.f32.mrb[4].mxu1 }
 0x13d   : > { %s1521_s1 = smov 4   ;;  %858 = vst.msk [vmem:[%s1737_s9 + $0x20] sm:$0xff] %vm853_vm2, %v806_v41  ;;  %v1245_v42 = vpop.f32.mrb[6].mxu0  ;;  %s917_s20 = sadd.s32 %s1498_s29, %s1171_s17  ;;  %v1228_v49 = vpop.f32.mrb[5].mxu1 }
 0x13e   : > { %1254 = dma.vmem_to_hbm [thread:$0]  (%p1642_p10), %s1746_s11, 128, %s1753_s18, %s871_s8, %s1519_s2, %s1520_s15, %s1521_s1   ;;  %v809_v43 = vpop.f32.mrb[7].mxu0  ;;  %v640_v50 = vpop.f32.mrb[6].mxu1 }
 0x13f   : > { %861 = vst.msk [vmem:[%s1737_s9 + $0x38] sm:$0xff] %vm853_vm2, %v1245_v42  ;;  %859 = vst.msk [vmem:[%s1737_s9 + $0x28] sm:$0xff] %vm853_vm2, %v809_v43  ;;  %s442_s16 = scalar_lea.vmem [#allocation5], %s1124_s27  ;;  %s1172_s11 = sshll.u32 %s917_s20, 5  ;;  %v1248_v44 = vpop.f32.mrb[8].mxu0 }
 0x140   : > { %s921_s21 = sshll.u32 %s442_s16, 4  ;;  %864 = vst.msk [vmem:[%s1737_s9 + $0x50] sm:$0xff] %vm853_vm2, %v1248_v44  ;;  %v822_v45 = vpop.f32.mrb[9].mxu0  ;;  %s1801_s29 = scalar_lea.hbm %s1880_s7, %s1172_s11  ;;  %643 = vst [vmem:[%s442_s16] sm:$0x3] %v637_v47  ;;  %s1794_s21 = int_to_ptr.vmem [resolvable:$true] %s921_s21 }
 0x141   : > { %862 = vst.msk [vmem:[%s1737_s9 + $0x40] sm:$0xff] %vm853_vm2, %v822_v45  ;;  %v1249_v46 = vpop.f32.mrb[10].mxu0  ;;  %s885_s27 = scalar_lea.sflag [#allocation6], %s1729_s12  ;;  %s1400_s17 = scalar_lea.vmem %s1794_s21, 32 }
 0x142   : > { %865 = vst.msk [vmem:[%s1737_s9 + $0x58] sm:$0xff] %vm853_vm2, %v1249_v46  ;;  %v825_v48 = vpop.f32.mrb[11].mxu0  ;;  %p1401_p9 = scmp.ne.s32.totalorder %s1794_s21, %s1400_s17  ;;  %s1522_s8 = smov [#allocation5]  }
 0x143   : > { %863 = vst.msk [vmem:[%s1737_s9 + $0x48] sm:$0xff] %vm853_vm2, %v825_v48  ;;  %s1404_s14 = sshll.u32 %s1522_s8, 4  ;;  %s1405_s14 = int_to_ptr.vmem [resolvable:$false] %s1404_s14 }
 0x144   : > { %p1402_p11 = pnand %p1401_p9, %p1642_p10  ;;  %s1406_s0 = scalar_lea.vmem %s1405_s14, 64 }
 0x145   : > { %p1407_p0 = scmp.lt.s32.totalorder %s1794_s21, %s1405_s14  ;;  %p1408_p1 = scmp.lt.s32.totalorder %s1406_s0, %s1400_s17 }
 0x146   : > { %p1403_p13 = pneg %p1402_p11 }
 0x147   : > { %p1409_p2 = por %p1408_p1, %p1407_p0 }
 0x149   : > { %p1410_p3 = pnand %p1409_p2, %p1403_p13 }
 0x14b   : > { %1413 = shalt.err (!%p1410_p3)
}
 0x14c   : > { %s1414_s12 = scalar_lea.hbm %s1801_s29, 32  ;;  %s1418_s1 = scalar_lea.hbm %s1880_s7, 128 }
 0x14d   : > { %p1415_p4 = scmp.ne.s32.totalorder %s1801_s29, %s1414_s12  ;;  %p1419_p7 = scmp.lt.u32.totalorder %s1801_s29, %s1880_s7 }
 0x14e   : > { %p1420_p8 = scmp.lt.u32.totalorder %s1418_s1, %s1414_s12  ;;  %p1422_p11 = scmp.lt.u32.totalorder %s1414_s12, %s1801_s29 }
 0x14f   : > { %p1416_p5 = pnand %p1415_p4, %p1642_p10 }
 0x150   : > { %p1421_p9 = por %p1420_p8, %p1419_p7 }
 0x151   : > { %p1417_p6 = pneg %p1416_p5 }
 0x152   : > { %p1423_p13 = por %p1422_p11, %p1421_p9 }
 0x154   : > { %p1424_p0 = pnand %p1423_p13, %p1417_p6 }
 0x156   : > { %1427 = shalt.err (!%p1424_p0)
}
 0x157   : > { %1255 = dma.vmem_to_hbm [thread:$0]  (%p1642_p10), %s1794_s21, 32, %s1801_s29, %s885_s27   ;;  %v1229_v51 = vpop.f32.mrb[7].mxu1  ;;  %v1252_v52 = vpop.f32.mrb[12].mxu0 }
 0x158   : > { %868 = vst.msk [vmem:[%s1737_s9 + $0x70] sm:$0xff] %vm853_vm2, %v1252_v52  ;;  %v838_v53 = vpop.f32.mrb[13].mxu0 }
 0x159   : > { %866 = vst.msk [vmem:[%s1737_s9 + $0x60] sm:$0xff] %vm853_vm2, %v838_v53  ;;  %v1253_v54 = vpop.f32.mrb[14].mxu0 }
 0x15a   : > { %869 = vst.msk [vmem:[%s1737_s9 + $0x78] sm:$0xff] %vm853_vm2, %v1253_v54  ;;  %v841_v55 = vpop.f32.mrb[15].mxu0 }
 0x15b   : > { %867 = vst.msk [vmem:[%s1737_s9 + $0x68] sm:$0xff] %vm853_vm2, %v841_v55 }
 0x15c PF: > { %p1265_p1 = scmp.ge.s32.totalorder %s1514_s10, 2  ;;  %s933_s22 = sand.u32 1, %s1478_s24  }
 0x15d   : > { %s934_s21 = scalar_lea.sflag [#allocation4], %s933_s22 }
 0x15e   : > { %p1259_p10 = pnand %p1265_p1, %p1649_p12 }
 0x160   : > { %1469 = dma.done.wait (!%p1259_p10), %s934_s21, 128  }
 0x161   : > { %1471 = vsyncadd (!%p1259_p10), %s934_s21, 4294967168  ;;  %s955_s11 = scalar_lea.sflag [#allocation6], %s933_s22 }
 0x162   : > { %1473 = dma.done.wait (!%p1259_p10), %s955_s11, 32  }
 0x163   : > { %1475 = vsyncadd (!%p1259_p10), %s955_s11, 4294967264  ;;  %s24_s10 = sadd.s32 1, %s1514_s10   ;;  %s1898_s29 = sld [smem:[#allocation9_spill]] }
 0x164   : > { %p21_p2 = scmp.ge.s32.totalorder %s24_s10, 6   ;;  %s1899_s30 = sld [smem:[#allocation10_spill]] }
 0x165   : > { %s1900_s8 = sld [smem:[#allocation11_spill]]  ;;  %s1901_s9 = sld [smem:[#allocation12_spill]] }
 0x166   : > { %s1902_s24 = smov %s1482_s25  ;;  %s1903_s25 = smov %s1486_s26 }
 0x167   : > { %s1904_s26 = smov %s1647_s23  ;;  %s1905_s27 = smov %s1494_s28 }
 0x168   : > { %s1906_s28 = smov %s1636_s19  ;;  %23 = sbr.rel (!%p21_p2) target bundleno = 12 (0xc), region = 162 }
 0x16f   :  { %960 = vsyncpa [#allocation4], 1 }
 0x170   :  { %962 = vsyncpa [#allocation4 + $0x1], 1 }
 0x171   :  { %963 = vsyncpa [#allocation6], 1 }
 0x172   :  { %965 = vsyncpa [#allocation6 + $0x1], 1 }

</bundles_post_ra>
